<compile_context>
chip_gen: v7x
topology: tpu7x:2x2x1
jax: 0.10.0
libtpu: 0.0.40
codegen_flags: <defaults>
</compile_context>

<pallas_src>
import jax
import jax.numpy as jnp
from jax.experimental import pallas as pl
from jax.experimental.pallas import tpu as pltpu
from jax.scipy.special import gammaln, logsumexp


# --------------------------------------------------------------------------
# Tile selection helpers
# --------------------------------------------------------------------------
def _pick_lane_tile(n, target=1024):
    """Largest divisor of n that is <= target and a multiple of 128; else n."""
    if n <= target:
        return n
    for d in range(min(target, n), 0, -1):
        if n % d == 0 and d % 128 == 0:
            return d
    return n


def _pick_outer_tile(n, target):
    """Largest divisor of n that is <= target and a multiple of 8; else n."""
    if n <= target:
        return n
    for d in range(min(target, n), 0, -1):
        if n % d == 0 and d % 8 == 0:
            return d
    return n


def _choose_tiles(M, K, B, bytes_per_elem=4, target_block_bytes=2 * 1024 * 1024):
    """(TM, TB) tiles: ~2 MiB per big input block so two double-buffered
    streams stay far below even v5e's 16 MiB default scoped VMEM and v7x's
    64 MiB physical VMEM, while still amortizing the ~0.35 us/step overhead."""
    TB = _pick_lane_tile(B)
    rows = max(8, target_block_bytes // (bytes_per_elem * K * TB))
    TM = _pick_outer_tile(M, rows)
    return TM, TB


_COMPILER_PARAMS = pltpu.CompilerParams(
    dimension_semantics=("parallel", "parallel"),   # (M-tiles, B-tiles): independent
    vmem_limit_bytes=32 * 1024 * 1024,
)


# --------------------------------------------------------------------------
# Pallas kernels
# --------------------------------------------------------------------------
def _kl_categorical_kernel(lq_ref, logp_ref, out_ref):
    """KL(Cat(logits_q) || Cat(logits_p)) per (m, b); K on sublanes, B on lanes."""
    lq = lq_ref[...].astype(jnp.float32)        # (TM, K, TB)
    log_p = logp_ref[...].astype(jnp.float32)   # (TM, K, 1) -> broadcast over lanes

    m = jnp.max(lq, axis=1, keepdims=True)      # (TM, 1, TB)   sublane reduce
    e = jnp.exp(lq - m)                         # single full-tile EUP pass
    sum_e = jnp.sum(e, axis=1, keepdims=True)   # (TM, 1, TB)
    log_q = lq - m - jnp.log(sum_e)             # log_softmax, reusing m / sum_e
    # sum_k softmax_k * (log_q - log_p)  =  (sum_k e_k * (log_q - log_p)) / sum_e;
    # the reciprocal is applied once after the K-reduction (EUP approx slot).
    num = jnp.sum(e * (log_q - log_p), axis=1)            # (TM, TB)
    inv = pl.reciprocal(sum_e[:, 0, :], approx=True)      # (TM, TB)
    out_ref[...] = (num * inv).astype(out_ref.dtype)


def _kl_relaxed_kernel(lq_ref, x_ref, logp_ref, tq_ref, tp_ref, ltd_ref, out_ref):
    """Monte-Carlo KL: q.log_prob(z) - p.log_prob(z) for RelaxedOneHotCategorical.

    lgamma(K), sum(log z) and the exp-transform Jacobian cancel between q and p;
    the remaining (K-1)*(log tau_q - log tau_p) term arrives precomputed (ltd).
    x = log(z) is supplied by the wrapper (no in-kernel log, no log(0) hazard).
    """
    lq = lq_ref[...].astype(jnp.float32)    # (TM, K, TB)
    x = x_ref[...].astype(jnp.float32)      # (TM, K, TB)  == log z
    lp = logp_ref[...].astype(jnp.float32)  # (TM, K, 1)   -> broadcast over lanes
    tq = tq_ref[...].astype(jnp.float32)    # (TM, 1, 1)
    tp = tp_ref[...].astype(jnp.float32)    # (TM, 1, 1)   already clamped in wrapper
    ltd = ltd_ref[...].astype(jnp.float32)  # (TM, 1, 1)   (K-1)*(log tq - log tp)

    K = lq.shape[1]
    s_q = lq - tq * x                       # (TM, K, TB)
    s_p = lp - tp * x                       # (TM, K, TB)

    def sum_and_lse(s):
        m = jnp.max(s, axis=1, keepdims=True)                        # (TM, 1, TB)
        lse = jnp.log(jnp.sum(jnp.exp(s - m), axis=1)) + m[:, 0, :]  # (TM, TB)
        return jnp.sum(s, axis=1), lse                               # (TM, TB) each

    sq, lse_q = sum_and_lse(s_q)
    sp, lse_p = sum_and_lse(s_p)
    kl = ltd[:, 0, :] + (sq - K * lse_q) - (sp - K * lse_p)          # (TM, TB)
    # TODO(synk): the torch module raises RuntimeError on NaN log-probs; no
    # in-kernel exception equivalent, so any NaN would propagate as-is.
    out_ref[...] = kl.astype(out_ref.dtype)


# --------------------------------------------------------------------------
# pallas_call wrappers
# --------------------------------------------------------------------------
def kl_categorical(logits_q, logits_p):
    B, M, K = logits_q.shape
    # Prior-only work hoisted out of the grid loop: log_softmax over K, once.
    log_p3 = jax.nn.log_softmax(logits_p.astype(jnp.float32), axis=-1)[:, :, None]
    lq_t = jnp.transpose(logits_q, (1, 2, 0))                # (M, K, B): B on lanes

    TM, TB = _choose_tiles(M, K, B)
    grid = (M // TM, B // TB)
    kl_t = pl.pallas_call(
        _kl_categorical_kernel,
        grid=grid,
        in_specs=[
            pl.BlockSpec((TM, K, TB), lambda i, j: (i, 0, j)),
            pl.BlockSpec((TM, K, 1), lambda i, j: (i, 0, 0)),
        ],
        out_specs=pl.BlockSpec((TM, TB), lambda i, j: (i, j)),
        out_shape=jax.ShapeDtypeStruct((M, B), jnp.float32),
        compiler_params=_COMPILER_PARAMS,
    )(lq_t, log_p3)
    return kl_t.T                                            # (B, M)


def kl_relaxed(logits_q, tau_q, z, logits_p, tau_p, log_z=None):
    B, M, K = logits_q.shape
    if log_z is None:
        # Fall back to log(z); clamp so a bf16-underflowed zero does not poison
        # the result (the torch module would raise on the resulting NaN).
        log_z = jnp.log(jnp.maximum(z.astype(jnp.float32), 1e-30))

    # Prior / temperature work hoisted to the wrapper (tiny, per-M only).
    tq3 = tau_q.astype(jnp.float32).reshape(M, 1, 1)
    tp3 = jnp.clip(tau_p.astype(jnp.float32), 0.01, 10.0).reshape(M, 1, 1)
    ltd3 = (K - 1) * (jnp.log(tq3) - jnp.log(tp3))           # (M, 1, 1)
    lp3 = logits_p.astype(jnp.float32)[:, :, None]           # (M, K, 1)

    lq_t = jnp.transpose(logits_q, (1, 2, 0))                # (M, K, B)
    x_t = jnp.transpose(log_z, (1, 2, 0))                    # (M, K, B)

    TM, TB = _choose_tiles(M, K, B)
    grid = (M // TM, B // TB)
    kl_t = pl.pallas_call(
        _kl_relaxed_kernel,
        grid=grid,
        in_specs=[
            pl.BlockSpec((TM, K, TB), lambda i, j: (i, 0, j)),
            pl.BlockSpec((TM, K, TB), lambda i, j: (i, 0, j)),
            pl.BlockSpec((TM, K, 1), lambda i, j: (i, 0, 0)),
            pl.BlockSpec((TM, 1, 1), lambda i, j: (i, 0, 0)),
            pl.BlockSpec((TM, 1, 1), lambda i, j: (i, 0, 0)),
            pl.BlockSpec((TM, 1, 1), lambda i, j: (i, 0, 0)),
        ],
        out_specs=pl.BlockSpec((TM, TB), lambda i, j: (i, j)),
        out_shape=jax.ShapeDtypeStruct((M, B), jnp.float32),
        compiler_params=_COMPILER_PARAMS,
    )(lq_t, x_t, lp3, tq3, tp3, ltd3)
    return kl_t.T                                            # (B, M)


# --------------------------------------------------------------------------
# Module-equivalent wrapper (parameters initialized like torch __init__: ones)
# --------------------------------------------------------------------------
class KLConcrete:
    def __init__(self, K, M, kl_type="categorical", logits_p="train", tau_p=1.0):
        self.K, self.M = K, M
        self.kl_type = kl_type
        # torch init: l = torch.ones(M, K) for both 'uniform' and 'train'
        self.logits_p = jnp.ones((M, K), jnp.float32)
        if kl_type == "relaxed":
            if tau_p == "train":
                self.tau_p = jnp.ones((M, 1), jnp.float32)
            else:
                assert isinstance(tau_p, (int, float)) and tau_p > 0
                self.tau_p = jnp.ones((M, 1), jnp.float32) * float(tau_p)

    def __call__(self, q, z, logits_q, log_z=None):
        """q: (q_logits, q_temperature) tuple standing in for the torch
        RelaxedOneHotCategorical posterior (only used for kl_type='relaxed').
        log_z: optional caller-provided log of z (avoids one full exp/log pass)."""
        if self.kl_type == "categorical":
            return kl_categorical(logits_q, self.logits_p)
        elif self.kl_type == "relaxed":
            q_logits, q_tau = q
            return kl_relaxed(q_logits, q_tau, z, self.logits_p, self.tau_p,
                              log_z=log_z)
        else:
            raise KeyError(self.kl_type)


# --------------------------------------------------------------------------
# Main
# --------------------------------------------------------------------------
if __name__ == "__main__":
    B, M, K = 2, 8, 32
    key = jax.random.PRNGKey(0)
    k1, k2 = jax.random.split(key)
    logits_q = jax.random.normal(k1, (B, M, K), jnp.float32)

    # ---------------- categorical path (module default) ----------------
    mod = KLConcrete(K, M, kl_type="categorical")
    z_onehot = jax.nn.one_hot(jnp.argmax(logits_q, -1), K, dtype=jnp.float32)
    kl_cat = jax.block_until_ready(mod(None, z_onehot, logits_q))
    assert kl_cat.shape == (B, M)

    log_q = jax.nn.log_softmax(logits_q, -1)
    log_p = jax.nn.log_softmax(mod.logits_p, -1)[None]
    ref_cat = jnp.sum(jnp.exp(log_q) * (log_q - log_p), axis=-1)
    # tolerance loosened slightly for the approximate EUP reciprocal
    assert jnp.allclose(kl_cat, ref_cat, atol=5e-3, rtol=5e-3), (kl_cat, ref_cat)

    # ---------------- relaxed (Monte-Carlo) path ------------------------
    mod_r = KLConcrete(K, M, kl_type="relaxed", tau_p=1.0)
    tau_q = jnp.full((M, 1), 0.5, jnp.float32)
    u = jax.random.uniform(k2, (B, M, K), minval=1e-6, maxval=1.0 - 1e-6)
    gumbel = -jnp.log(-jnp.log(u))
    y = (logits_q + gumbel) / tau_q[None]
    log_z = jax.nn.log_softmax(y, -1)          # caller-side log of the relaxed sample
    z = jnp.exp(log_z)                          # relaxed sample from q
    kl_rel = jax.block_until_ready(
        mod_r((logits_q, tau_q), z, logits_q, log_z=log_z))
    assert kl_rel.shape == (B, M)

    def relaxed_log_prob(logits, tau, zz):
        # full torch RelaxedOneHotCategorical.log_prob (incl. exp-transform jacobian)
        Kc = zz.shape[-1]
        x = jnp.log(zz)
        s = logits - tau * x
        score = jnp.sum(s - logsumexp(s, axis=-1, keepdims=True), axis=-1)
        log_scale = gammaln(float(Kc)) + (Kc - 1) * jnp.log(tau)[..., 0]
        return score + log_scale - jnp.sum(x, axis=-1)

    tp = jnp.clip(mod_r.tau_p, 0.01, 10.0)
    ref_rel = (relaxed_log_prob(logits_q, tau_q[None], z)
               - relaxed_log_prob(mod_r.logits_p[None], tp[None], z))
    assert jnp.allclose(kl_rel, ref_rel, atol=1e-3, rtol=1e-3), (kl_rel, ref_rel)

    print("KERNEL_OK")
</pallas_src>

<mosaic_0001>
module attributes {stable_mosaic.version = 11 : i64} {
  func.func @_kl_categorical_kernel(%arg0: i32, %arg1: i32, %arg2: memref<8x32x2xf32, #tpu.memory_space<vmem>>, %arg3: memref<8x32x1xf32, #tpu.memory_space<vmem>>, %arg4: memref<8x2xf32, #tpu.memory_space<vmem>>) attributes {dimension_semantics = [#tpu.dimension_semantics<parallel>, #tpu.dimension_semantics<parallel>], iteration_bounds = array<i64: 1, 1>, scalar_prefetch = 0 : i64, scratch_operands = 0 : i64, tpu.core_type = #tpu.core_type<tc>, window_params = [{transform_indices = @transform_0, window_bounds = array<i64: 8, 32, 2>}, {transform_indices = @transform_1, window_bounds = array<i64: 8, 32, 1>}, {transform_indices = @transform_2, window_bounds = array<i64: 8, 2>}]} {
    %c0 = arith.constant 0 : index
    %c0_0 = arith.constant 0 : index
    %c0_1 = arith.constant 0 : index
    %0 = vector.load %arg2[%c0, %c0_0, %c0_1] : memref<8x32x2xf32, #tpu.memory_space<vmem>>, vector<8x32x2xf32>
    %c0_2 = arith.constant 0 : index
    %c0_3 = arith.constant 0 : index
    %c0_4 = arith.constant 0 : index
    %1 = vector.load %arg3[%c0_2, %c0_3, %c0_4] : memref<8x32x1xf32, #tpu.memory_space<vmem>>, vector<8x32x1xf32>
    %cst = arith.constant dense<0xFF800000> : vector<8x2xf32>
    %2 = vector.multi_reduction <maximumf>, %0, %cst [1] : vector<8x32x2xf32> to vector<8x2xf32>
    %3 = vector.shape_cast %2 : vector<8x2xf32> to vector<8x1x2xf32>
    %4 = vector.broadcast %3 : vector<8x1x2xf32> to vector<8x32x2xf32>
    %5 = arith.subf %0, %4 : vector<8x32x2xf32>
    %6 = math.exp %5 : vector<8x32x2xf32>
    %cst_5 = arith.constant dense<0.000000e+00> : vector<8x2xf32>
    %7 = vector.multi_reduction <add>, %6, %cst_5 [1] : vector<8x32x2xf32> to vector<8x2xf32>
    %8 = vector.shape_cast %7 : vector<8x2xf32> to vector<8x1x2xf32>
    %9 = vector.broadcast %3 : vector<8x1x2xf32> to vector<8x32x2xf32>
    %10 = arith.subf %0, %9 : vector<8x32x2xf32>
    %11 = math.log %8 : vector<8x1x2xf32>
    %12 = vector.broadcast %11 : vector<8x1x2xf32> to vector<8x32x2xf32>
    %13 = arith.subf %10, %12 : vector<8x32x2xf32>
    %14 = vector.broadcast %1 : vector<8x32x1xf32> to vector<8x32x2xf32>
    %15 = arith.subf %13, %14 : vector<8x32x2xf32>
    %16 = arith.mulf %6, %15 : vector<8x32x2xf32>
    %cst_6 = arith.constant dense<0.000000e+00> : vector<8x2xf32>
    %17 = vector.multi_reduction <add>, %16, %cst_6 [1] : vector<8x32x2xf32> to vector<8x2xf32>
    %18 = vector.shape_cast %8 : vector<8x1x2xf32> to vector<8x2xf32>
    %19 = tpu.reciprocal %18 {approx = true} : vector<8x2xf32> -> vector<8x2xf32>
    %20 = arith.mulf %17, %19 : vector<8x2xf32>
    %c0_7 = arith.constant 0 : index
    %c0_8 = arith.constant 0 : index
    %21 = vector.load %arg4[%c0_7, %c0_8] : memref<8x2xf32, #tpu.memory_space<vmem>>, vector<8x2xf32>
    tpu.vector_store %arg4[%c0_7, %c0_8], %20 {strides = array<i32>} : memref<8x2xf32, #tpu.memory_space<vmem>>, vector<8x2xf32>,
    return
  }
  func.func @transform_0(%arg0: i32, %arg1: i32) -> (i32, i32, i32) {
    %c0_i32 = arith.constant 0 : i32
    %c0_i32_0 = arith.constant 0 : i32
    return %arg0, %c0_i32, %arg1 : i32, i32, i32
  }
  func.func @transform_1(%arg0: i32, %arg1: i32) -> (i32, i32, i32) {
    %c0_i32 = arith.constant 0 : i32
    %c0_i32_0 = arith.constant 0 : i32
    %c0_i32_1 = arith.constant 0 : i32
    return %arg0, %c0_i32, %c0_i32_0 : i32, i32, i32
  }
  func.func @transform_2(%arg0: i32, %arg1: i32) -> (i32, i32) {
    %c0_i32 = arith.constant 0 : i32
    return %arg0, %arg1 : i32, i32
  }
}

</mosaic_0001>

<bundles_post_ra>
// kernel: tpu_custom_call.1
= control target key start
LH: loop header
LB: loop body
LE: loop exit
PB: predicated region body
PF: predicated region fallthrough
CT: control target
= control target key end

     0   :  { %v899_v0 = vmov 0   ;;  %vm75_vm0 = vcmask 15360   ;;  %vm780_vm1 = vcmask 1041409   ;;  %vm782_vm2 = vcmask 1042434   ;;  %s1696_s1 = inlined_call_operand.vmem [shape: f32[8,32,1], index: 1, kind: input, shape index: {}]   ;;  %s1697_s0 = inlined_call_operand.vmem [shape: f32[8,32,2], index: 0, kind: input, shape index: {}]   ;;  %s1698_s2 = inlined_call_operand.vmem [shape: f32[8,2], index: 2, kind: output, shape index: {}]  }
   0x1   :  { %802 = vset.pattern.permute.xlu1 %v899_v0  ;;  %801 = vset.pattern.permute.xlu0 %v899_v0  ;;  %v45_v1 = vld [vmem:[%s1696_s1 + $0x10] sm:$0xff]  ;;  %v43_v2 = vld [vmem:[%s1696_s1] sm:$0xff]  ;;  %v46_v3 = vld [vmem:[%s1696_s1 + $0x18] sm:$0xff]  ;;  %vm784_vm3 = vcmask 1043459   ;;  %vm786_vm4 = vcmask 1044484   ;;  %vm788_vm5 = vcmask 1045509  }
   0x2   :  { %440 = vperm.xlu1 %802, %v45_v1   ;;  %430 = vperm.xlu0 %801, %v43_v2   ;;  %v44_v4 = vld [vmem:[%s1696_s1 + $0x8] sm:$0xff]  ;;  %v47_v6 = vld [vmem:[%s1696_s1 + $0x20] sm:$0xff]  ;;  %v50_v7 = vld [vmem:[%s1696_s1 + $0x38] sm:$0xff]  ;;  %vm790_vm6 = vcmask 1046534   ;;  %vm792_vm7 = vcmask 1047559  }
   0x3   :  { %v48_v5 = vld [vmem:[%s1696_s1 + $0x28] sm:$0xff]  ;;  %v49_v8 = vld [vmem:[%s1696_s1 + $0x30] sm:$0xff]  ;;  %v51_v10 = vld [vmem:[%s1696_s1 + $0x40] sm:$0xff] }
   0x4   :  { %v52_v9 = vld [vmem:[%s1696_s1 + $0x48] sm:$0xff]  ;;  %v948_v11 = vld [vmem:[%s1697_s0] sm:$0xff]  ;;  %v968_v17 = vld [vmem:[%s1697_s0 + $0x10] sm:$0xff] }
   0x5   :  { %v953_v12 = vld [vmem:[%s1697_s0 + $0x8] sm:$0xff]  ;;  %v55_v14 = vld [vmem:[%s1696_s1 + $0x60] sm:$0xff]  ;;  %v76_v15 = vsel %vm75_vm0, %v948_v11, -inf  ;;  %v53_v19 = vld [vmem:[%s1696_s1 + $0x50] sm:$0xff]  ;;  %v79_v23 = vsel %vm75_vm0, %v968_v17, -inf }
   0x6   :  { %445 = vperm.xlu1 %802, %v46_v3   ;;  %435 = vperm.xlu0 %801, %v44_v4   ;;  %v56_v13 = vld [vmem:[%s1696_s1 + $0x68] sm:$0xff]  ;;  %v77_v16 = vsel %vm75_vm0, %v953_v12, -inf  ;;  %v59_v18 = vld [vmem:[%s1696_s1 + $0x80] sm:$0xff]  ;;  %v991_v24 = vld [vmem:[%s1697_s0 + $0x18] sm:$0xff] }
   0x7   :  { %v78_v20 = vmax.f32 %v76_v15, %v77_v16  ;;  %v979_v21 = vld [vmem:[%s1697_s0 + $0x20] sm:$0xff]  ;;  %v984_v22 = vld [vmem:[%s1697_s0 + $0x28] sm:$0xff]  ;;  %v57_v25 = vld [vmem:[%s1696_s1 + $0x70] sm:$0xff]  ;;  %v81_v31 = vsel %vm75_vm0, %v991_v24, -inf }
   0x8   :  { %v60_v26 = vld [vmem:[%s1696_s1 + $0x88] sm:$0xff]  ;;  %v89_v27 = vsel %vm75_vm0, %v979_v21, -inf  ;;  %v90_v28 = vsel %vm75_vm0, %v984_v22, -inf  ;;  %v1006_v30 = vld [vmem:[%s1697_s0 + $0x30] sm:$0xff]  ;;  %v63_v34 = vld [vmem:[%s1696_s1 + $0xa0] sm:$0xff] }
   0x9   :  { %v80_v29 = vmax.f32 %v78_v20, %v79_v23  ;;  %v64_v32 = vld [vmem:[%s1696_s1 + $0xa8] sm:$0xff]  ;;  %v91_v33 = vmax.f32 %v89_v27, %v90_v28  ;;  %v92_v35 = vsel %vm75_vm0, %v1006_v30, -inf  ;;  %v1021_v36 = vld [vmem:[%s1697_s0 + $0x40] sm:$0xff]  ;;  %v1031_v39 = vld [vmem:[%s1697_s0 + $0x38] sm:$0xff] }
   0xa   :  { %455 = vperm.xlu1 %802, %v48_v5   ;;  %450 = vperm.xlu0 %801, %v47_v6   ;;  %v1026_v37 = vld [vmem:[%s1697_s0 + $0x48] sm:$0xff]  ;;  %v102_v41 = vsel %vm75_vm0, %v1021_v36, -inf  ;;  %v61_v43 = vld [vmem:[%s1696_s1 + $0x90] sm:$0xff]  ;;  %v54_v44 = vld [vmem:[%s1696_s1 + $0x58] sm:$0xff]  ;;  %v94_v45 = vsel %vm75_vm0, %v1031_v39, -inf }
   0xb   :  { %v82_v38 = vmax.f32 %v80_v29, %v81_v31  ;;  %v93_v40 = vmax.f32 %v91_v33, %v92_v35  ;;  %v103_v42 = vsel %vm75_vm0, %v1026_v37, -inf  ;;  %v1048_v46 = vld [vmem:[%s1697_s0 + $0x50] sm:$0xff]  ;;  %v1053_v48 = vld [vmem:[%s1697_s0 + $0x60] sm:$0xff]  ;;  %v1058_v49 = vld [vmem:[%s1697_s0 + $0x68] sm:$0xff] }
   0xc   :  { %v104_v50 = vmax.f32 %v102_v41, %v103_v42  ;;  %v105_v52 = vsel %vm75_vm0, %v1048_v46, -inf  ;;  %v68_v53 = vld [vmem:[%s1696_s1 + $0xc8] sm:$0xff]  ;;  %v67_v54 = vld [vmem:[%s1696_s1 + $0xc0] sm:$0xff]  ;;  %v1071_v55 = vld [vmem:[%s1697_s0 + $0x58] sm:$0xff]  ;;  %v115_v56 = vsel %vm75_vm0, %v1053_v48, -inf  ;;  %v116_v57 = vsel %vm75_vm0, %v1058_v49, -inf }
   0xd   :  { %v83_v47 = vrot.slane %v82_v38, 4  ;;  %v95_v51 = vmax.f32 %v93_v40, %v94_v45  ;;  %v1080_v59 = vld [vmem:[%s1697_s0 + $0x70] sm:$0xff]  ;;  %v1085_v60 = vld [vmem:[%s1697_s0 + $0x80] sm:$0xff]  ;;  %v1090_v61 = vld [vmem:[%s1697_s0 + $0x88] sm:$0xff]  ;;  %v107_v0 = vsel %vm75_vm0, %v1071_v55, -inf  ;;  %v117_v1 = vmax.f32 %v115_v56, %v116_v57 }
   0xe   :  { %465 = vperm.xlu1 %802, %v50_v7   ;;  %460 = vperm.xlu0 %801, %v49_v8   ;;  %v106_v62 = vmax.f32 %v104_v50, %v105_v52  ;;  %v65_v2 = vld [vmem:[%s1696_s1 + $0xb0] sm:$0xff]  ;;  %v58_v3 = vld [vmem:[%s1696_s1 + $0x78] sm:$0xff]  ;;  %v118_v4 = vsel %vm75_vm0, %v1080_v59, -inf  ;;  %v128_v5 = vsel %vm75_vm0, %v1085_v60, -inf  ;;  %v129_v6 = vsel %vm75_vm0, %v1090_v61, -inf  ;;  %v71_v20 = vld [vmem:[%s1696_s1 + $0xe0] sm:$0xff] }
   0xf   :  { %v84_v58 = vmax.f32 %v82_v38, %v83_v47  ;;  %v96_v63 = vrot.slane %v95_v51, 4  ;;  %v1109_v8 = vld [vmem:[%s1697_s0 + $0x78] sm:$0xff]  ;;  %v119_v16 = vmax.f32 %v117_v1, %v118_v4  ;;  %v1148_v31 = vld [vmem:[%s1697_s0 + $0xb0] sm:$0xff]  ;;  %v1158_v33 = vld [vmem:[%s1697_s0 + $0xc8] sm:$0xff] }
  0x10   :  { %v120_v23 = vsel %vm75_vm0, %v1109_v8, -inf  ;;  %v1139_v27 = vld [vmem:[%s1697_s0 + $0x98] sm:$0xff]  ;;  %v69_v41 = vld [vmem:[%s1696_s1 + $0xd0] sm:$0xff]  ;;  %v144_v47 = vsel %vm75_vm0, %v1148_v31, -inf }
  0x11   :  { %v85_v7 = vrot.slane %v84_v58, 2  ;;  %v97_v15 = vmax.f32 %v95_v51, %v96_v63  ;;  %v121_v38 = vmax.f32 %v119_v16, %v120_v23  ;;  %v62_v42 = vld [vmem:[%s1696_s1 + $0x98] sm:$0xff]  ;;  %v155_v51 = vsel %vm75_vm0, %v1158_v33, -inf }
  0x12   :  { %475 = vperm.xlu1 %802, %v52_v9   ;;  %470 = vperm.xlu0 %801, %v51_v10   ;;  %v1114_v9 = vld [vmem:[%s1697_s0 + $0x90] sm:$0xff]  ;;  %v108_v10 = vmax.f32 %v106_v62, %v107_v0  ;;  %v1177_v52 = vld [vmem:[%s1697_s0 + $0xb8] sm:$0xff] }
  0x13   :  { %v122_v57 = vrot.slane %v121_v38, 4  ;;  %v73_v62 = vld [vmem:[%s1696_s1 + $0xf0] sm:$0xff]  ;;  %v66_v63 = vld [vmem:[%s1696_s1 + $0xb8] sm:$0xff] }
  0x14   :  { %v109_v35 = vrot.slane %v108_v10, 4  ;;  %v74_v16 = vld [vmem:[%s1696_s1 + $0xf8] sm:$0xff] }
  0x16   :  { %495 = vperm.xlu1 %802, %v56_v13   ;;  %490 = vperm.xlu0 %801, %v55_v14   ;;  %v1119_v13 = vld [vmem:[%s1697_s0 + $0xa0] sm:$0xff]  ;;  %v1124_v14 = vld [vmem:[%s1697_s0 + $0xa8] sm:$0xff]  ;;  %v110_v56 = vmax.f32 %v108_v10, %v109_v35  ;;  %v123_v10 = vmax.f32 %v121_v38, %v122_v57 }
  0x17   :  { %v141_v28 = vsel %vm75_vm0, %v1119_v13, -inf  ;;  %v142_v29 = vsel %vm75_vm0, %v1124_v14, -inf }
  0x1a   :  { %510 = vperm.xlu1 %802, %v59_v18   ;;  %480 = vperm.xlu0 %801, %v53_v19   ;;  %v130_v18 = vmax.f32 %v128_v5, %v129_v6  ;;  %v72_v19 = vld [vmem:[%s1696_s1 + $0xe8] sm:$0xff]  ;;  %v1197_v5 = vld [vmem:[%s1697_s0 + $0xd8] sm:$0xff] }
  0x1e   :  { %500 = vperm.xlu1 %802, %v57_v25   ;;  %515 = vperm.xlu0 %801, %v60_v26   ;;  %v131_v25 = vsel %vm75_vm0, %v1114_v9, -inf  ;;  %v86_v26 = vmax.f32 %v84_v58, %v85_v7  ;;  %v111_v7 = vrot.slane %v110_v56, 2 }
  0x1f   :  { %v132_v40 = vmax.f32 %v130_v18, %v131_v25  ;;  %v70_v18 = vld [vmem:[%s1696_s1 + $0xd8] sm:$0xff]  ;;  %v159_v25 = vsel %vm75_vm0, %v1197_v5, -inf }
  0x20   :  { %v87_v45 = vrot.slane %v86_v26, 1 }
  0x22   :  { %535 = vperm.xlu1 %802, %v64_v32   ;;  %530 = vperm.xlu0 %801, %v63_v34   ;;  %v1153_v32 = vld [vmem:[%s1697_s0 + $0xc0] sm:$0xff]  ;;  %v98_v34 = vrot.slane %v97_v15, 2 }
  0x23   :  { %v154_v50 = vsel %vm75_vm0, %v1153_v32, -inf }
  0x24   :  { %v156_v1 = vmax.f32 %v154_v50, %v155_v51 }
  0x26   :  { %520 = vperm.xlu1 %802, %v61_v43   ;;  %485 = vperm.xlu0 %801, %v54_v44   ;;  %v133_v43 = vsel %vm75_vm0, %v1139_v27, -inf  ;;  %v143_v44 = vmax.f32 %v141_v28, %v142_v29  ;;  %v112_v29 = vmax.f32 %v110_v56, %v111_v7 }
  0x27   :  { %v134_v58 = vmax.f32 %v132_v40, %v133_v43  ;;  %v1226_v43 = vld [vmem:[%s1697_s0 + $0xe8] sm:$0xff] }
  0x28   :  { %v145_v0 = vmax.f32 %v143_v44, %v144_v47  ;;  %v168_v57 = vsel %vm75_vm0, %v1226_v43, -inf }
  0x2a   :  { %555 = vperm.xlu1 %802, %v68_v53   ;;  %550 = vperm.xlu0 %801, %v67_v54   ;;  %v1182_v53 = vld [vmem:[%s1697_s0 + $0xd0] sm:$0xff]  ;;  %v99_v54 = vmax.f32 %v97_v15, %v98_v34  ;;  %v135_v15 = vrot.slane %v134_v58, 4  ;;  %v124_v34 = vrot.slane %v123_v10, 2 }
  0x2b   :  { %v157_v4 = vsel %vm75_vm0, %v1182_v53, -inf }
  0x2c   :  { %v100_v6 = vrot.slane %v99_v54, 1  ;;  %v136_v35 = vmax.f32 %v134_v58, %v135_v15  ;;  %v125_v47 = vmax.f32 %v123_v10, %v124_v34 }
  0x2e   :  { %540 = vperm.xlu1 %802, %v65_v2   ;;  %505 = vperm.xlu0 %801, %v58_v3   ;;  %v88_v2 = vmax.f32 %v86_v26, %v87_v45  ;;  %v146_v3 = vsel %vm75_vm0, %v1177_v52, -inf  ;;  %v101_v28 = vmax.f32 %v99_v54, %v100_v6  ;;  %v113_v45 = vrot.slane %v112_v29, 1 }
  0x2f   :  { %v137_v50 = vrot.slane %v136_v35, 2 }
  0x30   :  { %v1206_v23 = vsub.f32 %v948_v11, %v88_v2  ;;  %v1211_v26 = vsub.f32 %v953_v12, %v88_v2  ;;  %v1221_v12 = vld [vmem:[%s1697_s0 + $0xe0] sm:$0xff]  ;;  %v1229_v44 = vsub.f32 %v979_v21, %v101_v28  ;;  %v1239_v58 = vsub.f32 %v991_v24, %v88_v2 }
  0x31   :  { %v167_v56 = vsel %vm75_vm0, %v1221_v12, -inf  ;;  %v1256_v10 = vsub.f32 %v1031_v39, %v101_v28 }
  0x32   :  { %575 = vperm.xlu1 %802, %v72_v19   ;;  %570 = vperm.xlu0 %801, %v71_v20   ;;  %v147_v19 = vmax.f32 %v145_v0, %v146_v3  ;;  %v158_v20 = vmax.f32 %v156_v1, %v157_v4  ;;  %v214_v11 = vmul.f32 1.442695, %v1211_v26  ;;  %v114_v0 = vmax.f32 %v112_v29, %v113_v45 }
  0x33   :  { %v126_v1 = vrot.slane %v125_v47, 1  ;;  %v138_v3 = vmax.f32 %v136_v35, %v137_v50  ;;  %v169_v6 = vmax.f32 %v167_v56, %v168_v57 }
  0x34   :  { %v148_v38 = vrot.slane %v147_v19, 4  ;;  %v160_v40 = vmax.f32 %v158_v20, %v159_v25  ;;  %v1268_v39 = vsub.f32 %v1026_v37, %v114_v0 }
  0x35   :  { %v139_v20 = vrot.slane %v138_v3, 1 }
  0x36   :  { %560 = vperm.xlu1 %802, %v69_v41   ;;  %525 = vperm.xlu0 %801, %v62_v42   ;;  %v212_v41 = vmul.f32 1.442695, %v1206_v23  ;;  %v1215_v42 = vsub.f32 %v968_v17, %v88_v2  ;;  %v1232_v17 = vsub.f32 %v984_v22, %v101_v28  ;;  %v149_v51 = vmax.f32 %v147_v19, %v148_v38  ;;  %v1248_v22 = vld [vmem:[%s1697_s0 + $0xf0] sm:$0xff] }
  0x37   :  { %v161_v54 = vrot.slane %v160_v40, 4  ;;  %v170_v7 = vsel %vm75_vm0, %v1248_v22, -inf  ;;  %v127_v19 = vmax.f32 %v125_v47, %v126_v1  ;;  %v226_v38 = vmul.f32 1.442695, %v1256_v10 }
  0x38   :  { %803 = vpow2.f32 %v212_v41  ;;  %v216_v21 = vmul.f32 1.442695, %v1215_v42  ;;  %v222_v4 = vmul.f32 1.442695, %v1232_v17  ;;  %v150_v24 = vrot.slane %v149_v51, 2 }
  0x39   :  { %805 = vpow2.f32 %v214_v11  ;;  %v162_v2 = vmax.f32 %v160_v40, %v161_v54  ;;  %v171_v34 = vmax.f32 %v169_v6, %v170_v7  ;;  %v140_v37 = vmax.f32 %v138_v3, %v139_v20 }
  0x3a   :  { %580 = vperm.xlu1 %802, %v73_v62   ;;  %545 = vperm.xlu0 %801, %v66_v63   ;;  %v1243_v62 = vsub.f32 %v1006_v30, %v101_v28  ;;  %v220_v63 = vmul.f32 1.442695, %v1229_v44  ;;  %807 = vpow2.f32 %v216_v21  ;;  %v218_v30 = vmul.f32 1.442695, %v1239_v58 }
  0x3b   :  { %v151_v25 = vmax.f32 %v149_v51, %v150_v24  ;;  %v163_v29 = vrot.slane %v162_v2, 2  ;;  %v1271_v28 = vsub.f32 %v1048_v46, %v114_v0  ;;  %v1285_v46 = vsub.f32 %v1053_v48, %v127_v19 }
  0x3c   :  { %v224_v15 = vmul.f32 1.442695, %v1243_v62  ;;  %809 = vpow2.f32 %v220_v63  ;;  %v230_v54 = vmul.f32 1.442695, %v1268_v39  ;;  %v1290_v56 = vsub.f32 %v1058_v49, %v127_v19 }
  0x3d   :  { %811 = vpow2.f32 %v222_v4  ;;  %v152_v47 = vrot.slane %v151_v25, 1  ;;  %v164_v50 = vmax.f32 %v162_v2, %v163_v29  ;;  %v1293_v57 = vsub.f32 %v1080_v59, %v127_v19 }
  0x3e   :  { %585 = vperm.xlu1 %802, %v74_v16   ;;  %565 = vperm.xlu0 %801, %v70_v18   ;;  %v1262_v16 = vld [vmem:[%s1697_s0 + $0xf8] sm:$0xff]  ;;  %v1265_v18 = vsub.f32 %v1021_v36, %v114_v0  ;;  %813 = vpow2.f32 %v218_v30  ;;  %v1277_v36 = vsub.f32 %v1071_v55, %v114_v0  ;;  %v232_v55 = vmul.f32 1.442695, %v1271_v28 }
  0x3f   :  { %v172_v35 = vsel %vm75_vm0, %v1262_v16, -inf  ;;  %815 = vpow2.f32 %v224_v15  ;;  %v1297_v63 = vsub.f32 %v1109_v8, %v127_v19  ;;  %v1304_v49 = vsub.f32 %v1085_v60, %v140_v37 }
  0x40   :  { %v173_v40 = vmax.f32 %v171_v34, %v172_v35  ;;  %v228_v11 = vmul.f32 1.442695, %v1265_v18  ;;  %817 = vpow2.f32 %v226_v38  ;;  %v234_v21 = vmul.f32 1.442695, %v1277_v36 }
  0x41   :  { %v236_v59 = vmul.f32 1.442695, %v1285_v46  ;;  %v153_v4 = vmax.f32 %v151_v25, %v152_v47  ;;  %v165_v24 = vrot.slane %v164_v50, 1  ;;  %v238_v6 = vmul.f32 1.442695, %v1290_v56 }
  0x42   :  { %v1279_v41 = vpop.eup %803  ;;  %v174_v51 = vrot.slane %v173_v40, 4  ;;  %819 = vpow2.f32 %v228_v11  ;;  %v240_v7 = vmul.f32 1.442695, %v1293_v57  ;;  %v1314_v30 = vsub.f32 %v1090_v61, %v140_v37 }
  0x43   :  { %v1282_v45 = vpop.eup %805  ;;  %v276_v0 = vsel %vm75_vm0, %v1279_v41, 0.0  ;;  %821 = vpow2.f32 %v230_v54  ;;  %v242_v19 = vmul.f32 1.442695, %v1297_v63  ;;  %v1320_v20 = vsub.f32 %v1114_v9, %v140_v37 }
  0x44   :  { %v175_v48 = vmax.f32 %v173_v40, %v174_v51  ;;  %v277_v1 = vsel %vm75_vm0, %v1282_v45, 0.0  ;;  %v1306_v3 = vpop.eup %807  ;;  %823 = vpow2.f32 %v232_v55  ;;  %v1325_v29 = vsub.f32 %v1139_v27, %v140_v37 }
  0x45   :  { %v278_v60 = vadd.f32 %v277_v1, %v276_v0  ;;  %v279_v25 = vsel %vm75_vm0, %v1306_v3, 0.0  ;;  %825 = vpow2.f32 %v234_v21  ;;  %v244_v61 = vmul.f32 1.442695, %v1304_v49 }
  0x46   :  { %v176_v2 = vrot.slane %v175_v48, 2  ;;  %v1309_v8 = vpop.eup %809  ;;  %1736 = vst [vmem:[#allocation2_spill] sm:$0xff] %v1325_v29  ;;  %827 = vpow2.f32 %v236_v59  ;;  %v1331_v38 = vsub.f32 %v1119_v13, %v153_v4  ;;  %v166_v40 = vmax.f32 %v164_v50, %v165_v24 }
  0x47   :  { %v1316_v15 = vpop.eup %811  ;;  %v289_v9 = vsel %vm75_vm0, %v1309_v8, 0.0  ;;  %829 = vpow2.f32 %v238_v6  ;;  %v1340_v27 = vsub.f32 %v1124_v14, %v153_v4  ;;  %v280_v37 = vadd.f32 %v279_v25, %v278_v60 }
  0x48   :  { %v177_v34 = vmax.f32 %v175_v48, %v176_v2  ;;  %v1327_v35 = vpop.eup %813  ;;  %1737 = vst [vmem:[#allocation3_spill] sm:$0xff] %v1331_v38  ;;  %v290_v47 = vsel %vm75_vm0, %v1316_v15, 0.0  ;;  %831 = vpow2.f32 %v240_v7  ;;  %v246_v51 = vmul.f32 1.442695, %v1314_v30 }
  0x49   :  { %v1333_v11 = vpop.eup %815  ;;  %v281_v13 = vsel %vm75_vm0, %v1327_v35, 0.0  ;;  %833 = vpow2.f32 %v242_v19  ;;  %v248_v50 = vmul.f32 1.442695, %v1320_v20  ;;  %v1347_v55 = vsub.f32 %v1148_v31, %v153_v4 }
  0x4a   :  { %v178_v54 = vrot.slane %v177_v34, 1  ;;  %v1349_v21 = vpop.eup %817  ;;  %v291_v48 = vadd.f32 %v290_v47, %v289_v9  ;;  %v252_v14 = vmul.f32 1.442695, %v1331_v38  ;;  %v1353_v0 = vsub.f32 %v1153_v32, %v166_v40 }
  0x4b   :  { %1738 = vst [vmem:[#allocation4_spill] sm:$0xff] %v1347_v55  ;;  %v292_v24 = vsel %vm75_vm0, %v1333_v11, 0.0  ;;  %835 = vpow2.f32 %v244_v61  ;;  %v254_v2 = vmul.f32 1.442695, %v1340_v27  ;;  %v1361_v31 = vsub.f32 %v1158_v33, %v166_v40 }
  0x4c   :  { %1739 = vst [vmem:[#allocation5_spill] sm:$0xff] %v1353_v0  ;;  %v179_v1 = vmax.f32 %v177_v34, %v178_v54  ;;  %v1355_v59 = vpop.eup %819  ;;  %v282_v6 = vadd.f32 %v281_v13, %v280_v37  ;;  %837 = vpow2.f32 %v246_v51  ;;  %v250_v7 = vmul.f32 1.442695, %v1325_v29 }
  0x4d   :  { %1740 = vst [vmem:[#allocation6_spill] sm:$0xff] %v1361_v31  ;;  %v1365_v60 = vsub.f32 %v1177_v52, %v153_v4  ;;  %v1367_v32 = vpop.eup %821  ;;  %839 = vpow2.f32 %v248_v50  ;;  %v256_v19 = vmul.f32 1.442695, %v1347_v55  ;;  %v1371_v25 = vsub.f32 %v1182_v53, %v166_v40 }
  0x4e   :  { %v1373_v34 = vpop.eup %823  ;;  %v293_v61 = vadd.f32 %v292_v24, %v291_v48  ;;  %841 = vpow2.f32 %v252_v14  ;;  %v260_v33 = vmul.f32 1.442695, %v1353_v0  ;;  %v1377_v9 = vsub.f32 %v1221_v12, %v179_v1 }
  0x4f   :  { %1741 = vst [vmem:[#allocation7_spill] sm:$0xff] %v1365_v60  ;;  %1742 = vst [vmem:[#allocation8_spill] sm:$0xff] %v1371_v25  ;;  %v1379_v47 = vpop.eup %825  ;;  %v294_v52 = vsel %vm75_vm0, %v1349_v21, 0.0  ;;  %843 = vpow2.f32 %v254_v2  ;;  %v262_v4 = vmul.f32 1.442695, %v1361_v31  ;;  %v1385_v53 = vsub.f32 %v1226_v43, %v179_v1 }
  0x50   :  { %1743 = vst [vmem:[#allocation9_spill] sm:$0xff] %v1373_v34  ;;  %1744 = vst [vmem:[#allocation10_spill] sm:$0xff] %v1377_v9  ;;  %v1387_v37 = vpop.eup %827  ;;  %v283_v51 = vrot.slane %v282_v6, 4  ;;  %845 = vpow2.f32 %v250_v7  ;;  %v258_v54 = vmul.f32 1.442695, %v1365_v60  ;;  %v302_v12 = vsel %vm75_vm0, %v1355_v59, 0.0 }
  0x51   :  { %1745 = vst [vmem:[#allocation11_spill] sm:$0xff] %v1379_v47  ;;  %1746 = vst [vmem:[#allocation12_spill] sm:$0xff] %v1385_v53  ;;  %v1390_v13 = vpop.eup %829  ;;  %v303_v50 = vsel %vm75_vm0, %v1367_v32, 0.0  ;;  %847 = vpow2.f32 %v256_v19  ;;  %v264_v48 = vmul.f32 1.442695, %v1371_v25  ;;  %v295_v43 = vadd.f32 %v294_v52, %v293_v61 }
  0x52   :  { %1747 = vst [vmem:[#allocation13_spill] sm:$0xff] %v1387_v37  ;;  %1748 = vst [vmem:[#allocation14_spill] sm:$0xff] %v1390_v13  ;;  %v1397_v14 = vpop.eup %831  ;;  %v1400_v24 = vsub.f32 %v1197_v5, %v166_v40  ;;  %849 = vpow2.f32 %v260_v33  ;;  %v268_v2 = vmul.f32 1.442695, %v1377_v9  ;;  %v1406_v0 = vsub.f32 %v1248_v22, %v179_v1 }
  0x53   :  { %1749 = vst [vmem:[#allocation15_spill] sm:$0xff] %v1397_v14  ;;  %v1403_v7 = vpop.eup %833  ;;  %851 = vpow2.f32 %v262_v4  ;;  %v270_v60 = vmul.f32 1.442695, %v1385_v53  ;;  %v284_v25 = vadd.f32 %v283_v51, %v282_v6  ;;  %v304_v55 = vadd.f32 %v303_v50, %v302_v12 }
  0x54   :  { %1750 = vst [vmem:[#allocation16_spill] sm:$0xff] %v1400_v24  ;;  %1751 = vst [vmem:[#allocation17_spill] sm:$0xff] %v1403_v7  ;;  %853 = vpow2.f32 %v258_v54  ;;  %v305_v5 = vsel %vm75_vm0, %v1373_v34, 0.0  ;;  %v296_v61 = vrot.slane %v295_v43, 4  ;;  %v315_v33 = vsel %vm75_vm0, %v1387_v37, 0.0 }
  0x55   :  { %1752 = vst [vmem:[#allocation18_spill] sm:$0xff] %v1406_v0  ;;  %v1409_v19 = vpop.eup %835  ;;  %855 = vpow2.f32 %v264_v48  ;;  %v266_v22 = vmul.f32 1.442695, %v1400_v24  ;;  %v316_v4 = vsel %vm75_vm0, %v1390_v13, 0.0  ;;  %v1423_v6 = vsub.f32 %v1262_v16, %v179_v1 }
  0x56   :  { %1753 = vst [vmem:[#allocation19_spill] sm:$0xff] %v1409_v19  ;;  %v1413_v40 = vpop.eup %837  ;;  %857 = vpow2.f32 %v268_v2  ;;  %v272_v51 = vmul.f32 1.442695, %v1406_v0  ;;  %v285_v50 = vrot.slane %v284_v25, 2  ;;  %v306_v48 = vadd.f32 %v305_v5, %v304_v55 }
  0x57   :  { %1754 = vst [vmem:[#allocation20_spill] sm:$0xff] %v1413_v40  ;;  %v1418_v52 = vpop.eup %839  ;;  %1756 = vst [vmem:[#allocation22_spill] sm:$0xff] %v1423_v6  ;;  %859 = vpow2.f32 %v270_v60  ;;  %v307_v2 = vsel %vm75_vm0, %v1379_v47, 0.0  ;;  %v317_v53 = vadd.f32 %v316_v4, %v315_v33  ;;  %v328_v24 = vsel %vm75_vm0, %v1409_v19, 0.0 }
  0x58   :  { %1755 = vst [vmem:[#allocation21_spill] sm:$0xff] %v1418_v52  ;;  %v1426_v54 = vpop.eup %841  ;;  %v329_v16 = vsel %vm75_vm0, %v1413_v40, 0.0  ;;  %861 = vpow2.f32 %v266_v22  ;;  %v297_v60 = vadd.f32 %v296_v61, %v295_v43  ;;  %v318_v0 = vsel %vm75_vm0, %v1397_v14, 0.0 }
  0x59   :  { %1757 = vst [vmem:[#allocation23_spill] sm:$0xff] %v1426_v54  ;;  %v1428_v12 = vpop.eup %843  ;;  %863 = vpow2.f32 %v272_v51  ;;  %v274_v55 = vmul.f32 1.442695, %v1423_v6  ;;  %v341_v33 = vsel %vm75_vm0, %v1426_v54, 0.0  ;;  %v308_v22 = vadd.f32 %v307_v2, %v306_v48 }
  0x5a   :  { %1758 = vst [vmem:[#allocation24_spill] sm:$0xff] %v1428_v12  ;;  %v1432_v9 = vpop.eup %845  ;;  %v342_v4 = vsel %vm75_vm0, %v1428_v12, 0.0  ;;  %v330_v40 = vadd.f32 %v329_v16, %v328_v24  ;;  %v286_v43 = vadd.f32 %v285_v50, %v284_v25  ;;  %v319_v61 = vadd.f32 %v318_v0, %v317_v53 }
  0x5b   :  { %1759 = vst [vmem:[#allocation25_spill] sm:$0xff] %v1432_v9  ;;  %v1438_v1 = vpop.eup %847  ;;  %v331_v51 = vsel %vm75_vm0, %v1418_v52, 0.0  ;;  %v298_v14 = vrot.slane %v297_v60, 2  ;;  %v320_v54 = vsel %vm75_vm0, %v1403_v7, 0.0  ;;  %v343_v47 = vadd.f32 %v342_v4, %v341_v33 }
  0x5c   :  { %1760 = vst [vmem:[#allocation26_spill] sm:$0xff] %v1438_v1  ;;  %v1443_v5 = vpop.eup %849  ;;  %865 = vpow2.f32 %v274_v55  ;;  %v344_v24 = vsel %vm75_vm0, %v1438_v1, 0.0  ;;  %v309_v50 = vrot.slane %v308_v22, 4  ;;  %v332_v48 = vadd.f32 %v331_v51, %v330_v40 }
  0x5d   :  { %1761 = vst [vmem:[#allocation27_spill] sm:$0xff] %v1443_v5  ;;  %v1449_v19 = vpop.eup %851  ;;  %v354_v25 = vsel %vm75_vm0, %v1443_v5, 0.0  ;;  %v321_v2 = vadd.f32 %v320_v54, %v319_v61  ;;  %v333_v16 = vsel %vm75_vm0, %v1432_v9, 0.0  ;;  %v287_v55 = vrot.slane %v286_v43, 1 }
  0x5e   :  { %1762 = vst [vmem:[#allocation28_spill] sm:$0xff] %v1449_v19  ;;  %v1451_v31 = vpop.eup %853  ;;  %v355_v0 = vsel %vm75_vm0, %v1449_v19, 0.0  ;;  %v299_v33 = vadd.f32 %v298_v14, %v297_v60  ;;  %v345_v4 = vadd.f32 %v344_v24, %v343_v47  ;;  %v310_v61 = vadd.f32 %v309_v50, %v308_v22 }
  0x5f   :  { %1763 = vst [vmem:[#allocation29_spill] sm:$0xff] %v1451_v31  ;;  %v1455_v6 = vpop.eup %855  ;;  %v356_v52 = vadd.f32 %v355_v0, %v354_v25  ;;  %v346_v5 = vsel %vm75_vm0, %v1451_v31, 0.0  ;;  %v334_v14 = vadd.f32 %v333_v16, %v332_v48  ;;  %v322_v47 = vrot.slane %v321_v2, 4 }
  0x60   :  { %1764 = vst [vmem:[#allocation30_spill] sm:$0xff] %v1455_v6  ;;  %v1459_v12 = vpop.eup %857  ;;  %v357_v19 = vsel %vm75_vm0, %v1455_v6, 0.0  ;;  %v347_v60 = vadd.f32 %v346_v5, %v345_v4  ;;  %v1483_v25 = vadd.f32 %v287_v55, %v286_v43  ;;  %v300_v0 = vrot.slane %v299_v33, 1 }
  0x61   :  { %1765 = vst [vmem:[#allocation31_spill] sm:$0xff] %v1459_v12  ;;  %v1467_v53 = vpop.eup %859  ;;  %v367_v1 = vsel %vm75_vm0, %v1459_v12, 0.0  ;;  %v358_v51 = vadd.f32 %v357_v19, %v356_v52  ;;  %v311_v12 = vrot.slane %v310_v61, 2  ;;  %v323_v37 = vadd.f32 %v322_v47, %v321_v2 }
  0x62   :  { %1766 = vst [vmem:[#allocation32_spill] sm:$0xff] %v1467_v53  ;;  %v1471_v7 = vpop.eup %861  ;;  %v368_v40 = vsel %vm75_vm0, %v1467_v53, 0.0  ;;  %v335_v53 = vrot.slane %v334_v14, 4  ;;  %v348_v22 = vrot.slane %v347_v60, 4  ;;  %867 = vlog2.f32 %v1483_v25 }
  0x63   :  { %1767 = vst [vmem:[#allocation33_spill] sm:$0xff] %v1471_v7  ;;  %v1481_v54 = vpop.eup %863  ;;  %v369_v24 = vadd.f32 %v368_v40, %v367_v1  ;;  %v359_v31 = vsel %vm75_vm0, %v1471_v7, 0.0  ;;  %v1492_v19 = vadd.f32 %v300_v0, %v299_v33  ;;  %v312_v1 = vadd.f32 %v311_v12, %v310_v61 }
  0x64   :  { %1768 = vst [vmem:[#allocation34_spill] sm:$0xff] %v1481_v54  ;;  %v370_v6 = vsel %vm75_vm0, %v1481_v54, 0.0  ;;  %v360_v50 = vadd.f32 %v359_v31, %v358_v51  ;;  %v336_v5 = vadd.f32 %v335_v53, %v334_v14  ;;  %v324_v43 = vrot.slane %v323_v37, 2 }
  0x65   :  { %v371_v48 = vadd.f32 %v370_v6, %v369_v24  ;;  %v349_v16 = vadd.f32 %v348_v22, %v347_v60  ;;  %869 = vlog2.f32 %v1492_v19  ;;  %v313_v2 = vrot.slane %v312_v1, 1 }
  0x66   :  { %v1489_v9 = vpop.eup %865  ;;  %v361_v55 = vrot.slane %v360_v50, 4  ;;  %v337_v31 = vrot.slane %v336_v5, 2  ;;  %v325_v6 = vadd.f32 %v324_v43, %v323_v37 }
  0x67   :  { %1769 = vst [vmem:[#allocation35_spill] sm:$0xff] %v1489_v9  ;;  %v372_v52 = vsel %vm75_vm0, %v1489_v9, 0.0  ;;  %v350_v47 = vrot.slane %v349_v16, 2  ;;  %v314_v9 = vadd.f32 %v313_v2, %v312_v1 }
  0x68   :  { %v373_v4 = vadd.f32 %v372_v52, %v371_v48  ;;  %v362_v51 = vadd.f32 %v361_v55, %v360_v50  ;;  %v338_v12 = vadd.f32 %v337_v31, %v336_v5  ;;  %v326_v61 = vrot.slane %v325_v6, 1 }
  0x69   :  { %v351_v14 = vadd.f32 %v350_v47, %v349_v16  ;;  %871 = vlog2.f32 %v314_v9 }
  0x6a   :  { %v374_v33 = vrot.slane %v373_v4, 4  ;;  %v363_v60 = vrot.slane %v362_v51, 2  ;;  %v339_v13 = vrot.slane %v338_v12, 1  ;;  %v327_v37 = vadd.f32 %v326_v61, %v325_v6 }
  0x6b   :  { %v352_v43 = vrot.slane %v351_v14, 1 }
  0x6c   :  { %v868_v53 = vpop.eup %867  ;;  %v375_v22 = vadd.f32 %v374_v33, %v373_v4  ;;  %v364_v55 = vadd.f32 %v363_v60, %v362_v51  ;;  %v340_v2 = vadd.f32 %v339_v13, %v338_v12  ;;  %873 = vlog2.f32 %v327_v37 }
  0x6d   :  { %v381_v54 = vmul.f32 0.6931472, %v868_v53  ;;  %v1503_v31 = vadd.f32 %v352_v43, %v351_v14 }
  0x6e   :  { %v376_v34 = vrot.slane %v375_v22, 2  ;;  %v365_v47 = vrot.slane %v364_v55, 1  ;;  %875 = vlog2.f32 %v340_v2 }
  0x6f   :  { %v870_v38 = vpop.eup %869  ;;  %v397_v50 = vsub.f32 %v1211_v26, %v381_v54  ;;  %v396_v5 = vsub.f32 %v1206_v23, %v381_v54  ;;  %v398_v6 = vsub.f32 %v1215_v42, %v381_v54  ;;  %877 = vlog2.f32 %v1503_v31 }
  0x70   :  { %v383_v16 = vmul.f32 0.6931472, %v870_v38  ;;  %v377_v33 = vadd.f32 %v376_v34, %v375_v22  ;;  %879 = vrcp.f32 %v1483_v25 }
  0x71   :  { %881 = vrcp.f32 %v1492_v19 }
  0x72   :  { %v401_v51 = vsub.f32 %v1232_v17, %v383_v16  ;;  %v400_v60 = vsub.f32 %v1229_v44, %v383_v16  ;;  %v402_v23 = vsub.f32 %v1243_v62, %v383_v16  ;;  %v378_v34 = vrot.slane %v377_v33, 1 }
  0x73   :  { %v872_v38 = vpop.eup %871  ;;  %v399_v17 = vsub.f32 %v1239_v58, %v381_v54 }
  0x74   :  { %v1525_v25 = vadd.f32 %v378_v34, %v377_v33 }
  0x81   :  { %v441_v40 = vpop.permute.xlu1 %440  ;;  %v431_v7 = vpop.permute.xlu0 %430 }
  0x82   :  { %v588_v61 = vsub.f32 %v396_v5, %v431_v7  ;;  %v590_v12 = vsub.f32 %v398_v6, %v441_v40  ;;  %v874_v40 = vpop.eup %873 }
  0x84   :  { %v620_v44 = vmul.f32 %v1279_v41, %v588_v61  ;;  %v622_v43 = vmul.f32 %v1306_v3, %v590_v12  ;;  %v403_v41 = vsub.f32 %v1256_v10, %v383_v16  ;;  %v876_v3 = vpop.eup %875  ;;  %v1540_v16 = vmul.f32 0.6931472, %v874_v40 }
  0x85   :  { %v1497_v24 = vpop.permute.xlu1 %445  ;;  %v436_v0 = vpop.permute.xlu0 %435 }
  0x86   :  { %v589_v4 = vsub.f32 %v397_v50, %v436_v0  ;;  %v1511_v0 = vadd.f32 %v365_v47, %v364_v55  ;;  %v652_v19 = vsel %vm75_vm0, %v620_v44, 0.0 }
  0x88   :  { %v621_v13 = vmul.f32 %v1282_v45, %v589_v4  ;;  %v1521_v45 = vmul.f32 0.6931472, %v872_v38  ;;  %883 = vlog2.f32 %v1511_v0 }
  0x89   :  { %v456_v48 = vpop.permute.xlu1 %455  ;;  %v451_v52 = vpop.permute.xlu0 %450  ;;  %885 = vrcp.f32 %v314_v9 }
  0x8a   :  { %v593_v62 = vsub.f32 %v401_v51, %v456_v48  ;;  %v592_v14 = vsub.f32 %v400_v60, %v451_v52  ;;  %v653_v22 = vsel %vm75_vm0, %v621_v13, 0.0  ;;  %v591_v48 = vsub.f32 %v399_v17, %v1497_v24 }
  0x8b   :  { %v405_v5 = vsub.f32 %v1268_v39, %v1521_v45  ;;  %887 = vrcp.f32 %v327_v37  ;;  %v404_v9 = vsub.f32 %v1265_v18, %v1521_v45  ;;  %v655_v24 = vsel %vm75_vm0, %v622_v43, 0.0  ;;  %v878_v39 = vpop.eup %877 }
  0x8c   :  { %v625_v52 = vmul.f32 %v1316_v15, %v593_v62  ;;  %v624_v55 = vmul.f32 %v1309_v8, %v592_v14  ;;  %889 = vlog2.f32 %v1525_v25  ;;  %v406_v8 = vsub.f32 %v1271_v28, %v1521_v45  ;;  %v1552_v33 = vpop.eup %879 }
  0x8d   :  { %v1500_v29 = vpop.permute.xlu1 %465  ;;  %v461_v1 = vpop.permute.xlu0 %460  ;;  %891 = vrcp.f32 %v340_v2  ;;  %v623_v37 = vmul.f32 %v1327_v35, %v591_v48  ;;  %v1554_v2 = vmul.f32 0.6931472, %v876_v3  ;;  %v407_v28 = vsub.f32 %v1277_v36, %v1521_v45 }
  0x8e   :  { %v594_v50 = vsub.f32 %v402_v23, %v461_v1  ;;  %v654_v1 = vadd.f32 %v653_v22, %v652_v19  ;;  %v665_v18 = vsel %vm75_vm0, %v624_v55, 0.0  ;;  %v595_v47 = vsub.f32 %v403_v41, %v1500_v29  ;;  %v1563_v38 = vpop.eup %881  ;;  %v1771_v19 = vld [vmem:[#allocation9_spill] sm:$0xff] }
  0x8f   :  { %v409_v35 = vsub.f32 %v1290_v56, %v1540_v16  ;;  %v408_v23 = vsub.f32 %v1285_v46, %v1540_v16  ;;  %v1567_v34 = vmul.f32 0.6931472, %v878_v39  ;;  %893 = vrcp.f32 %v1503_v31  ;;  %v1775_v39 = vld [vmem:[#allocation11_spill] sm:$0xff] }
  0x90   :  { %v626_v10 = vmul.f32 %v1333_v11, %v594_v50  ;;  %v666_v11 = vsel %vm75_vm0, %v625_v52, 0.0  ;;  %v656_v6 = vadd.f32 %v655_v24, %v654_v1  ;;  %v627_v56 = vmul.f32 %v1349_v21, %v595_v47  ;;  %v1774_v24 = vld [vmem:[#allocation13_spill] sm:$0xff] }
  0x91   :  { %v476_v53 = vpop.permute.xlu1 %475  ;;  %v471_v26 = vpop.permute.xlu0 %470  ;;  %v667_v29 = vadd.f32 %v666_v11, %v665_v18  ;;  %v411_v46 = vsub.f32 %v1297_v63, %v1540_v16  ;;  %v412_v45 = vsub.f32 %v1304_v49, %v1554_v2  ;;  %v413_v21 = vsub.f32 %v1314_v30, %v1554_v2 }
  0x92   :  { %v597_v61 = vsub.f32 %v405_v5, %v476_v53  ;;  %v668_v51 = vsel %vm75_vm0, %v626_v10, 0.0  ;;  %v596_v60 = vsub.f32 %v404_v9, %v471_v26  ;;  %v410_v53 = vsub.f32 %v1293_v57, %v1540_v16  ;;  %v884_v12 = vpop.eup %883  ;;  %v1773_v9 = vld [vmem:[#allocation14_spill] sm:$0xff] }
  0x93   :  { %v657_v26 = vsel %vm75_vm0, %v623_v37, 0.0  ;;  %v1574_v17 = vpop.eup %885  ;;  %v669_v14 = vadd.f32 %v668_v51, %v667_v29  ;;  %v417_v63 = vsub.f32 %v1340_v27, %v1567_v34  ;;  %v1590_v49 = vmul.f32 0.6931472, %v884_v12  ;;  %v1778_v51 = vld [vmem:[#allocation7_spill] sm:$0xff] }
  0x94   :  { %v658_v62 = vadd.f32 %v657_v26, %v656_v6  ;;  %v629_v57 = vmul.f32 %v1367_v32, %v597_v61  ;;  %v628_v31 = vmul.f32 %v1355_v59, %v596_v60  ;;  %v414_v32 = vsub.f32 %v1320_v20, %v1554_v2  ;;  %v1770_v59 = vld [vmem:[#allocation2_spill] sm:$0xff]  ;;  %v1772_v20 = vld [vmem:[#allocation3_spill] sm:$0xff]  ;;  %v1777_v6 = vld [vmem:[#allocation4_spill] sm:$0xff] }
  0x95   :  { %v1514_v42 = vpop.permute.xlu1 %495  ;;  %v1516_v7 = vpop.permute.xlu0 %490  ;;  %v416_v3 = vsub.f32 %v1772_v20, %v1567_v34  ;;  %v418_v61 = vsub.f32 %v1777_v6, %v1567_v34  ;;  %v419_v60 = vsub.f32 %v1778_v51, %v1567_v34  ;;  %v1781_v26 = vld [vmem:[#allocation8_spill] sm:$0xff]  ;;  %v1787_v6 = vld [vmem:[#allocation18_spill] sm:$0xff]  ;;  %895 = vrcp.f32 %v1511_v0 }
  0x96   :  { %v601_v22 = vsub.f32 %v409_v35, %v1514_v42  ;;  %v600_v50 = vsub.f32 %v408_v23, %v1516_v7  ;;  %v1584_v40 = vpop.eup %887  ;;  %v415_v42 = vsub.f32 %v1770_v59, %v1554_v2  ;;  %v670_v7 = vsel %vm75_vm0, %v627_v56, 0.0  ;;  %v1779_v23 = vld [vmem:[#allocation15_spill] sm:$0xff] }
  0x97   :  { %v659_v27 = vrot.slane %v658_v62, 4  ;;  %v671_v1 = vadd.f32 %v670_v7, %v669_v14  ;;  %v679_v5 = vsel %vm75_vm0, %v629_v57, 0.0  ;;  %v678_v10 = vsel %vm75_vm0, %v628_v31, 0.0 }
  0x98   :  { %v633_v16 = vmul.f32 %v1773_v9, %v601_v22  ;;  %v422_v56 = vsub.f32 %v1781_v26, %v1590_v49  ;;  %v680_v31 = vadd.f32 %v679_v5, %v678_v10  ;;  %v1782_v22 = vld [vmem:[#allocation16_spill] sm:$0xff]  ;;  %897 = vrcp.f32 %v1525_v25 }
  0x99   :  { %v1529_v58 = vpop.permute.xlu1 %510  ;;  %v481_v54 = vpop.permute.xlu0 %480  ;;  %v660_v14 = vadd.f32 %v659_v27, %v658_v62  ;;  %v672_v57 = vrot.slane %v671_v1, 4  ;;  %v1783_v62 = vld [vmem:[#allocation12_spill] sm:$0xff] }
  0x9a   :  { %v598_v44 = vsub.f32 %v406_v8, %v481_v54  ;;  %v890_v54 = vpop.eup %889  ;;  %v632_v8 = vmul.f32 %v1774_v24, %v600_v50  ;;  %v423_v50 = vsub.f32 %v1782_v22, %v1590_v49 }
  0x9b   :  { %v1596_v55 = vpop.eup %891 }
  0x9c   :  { %v630_v30 = vmul.f32 %v1771_v19, %v598_v44  ;;  %v1619_v44 = vpop.eup %893 }
  0x9d   :  { %v501_v15 = vpop.permute.xlu1 %500  ;;  %v1546_v4 = vpop.permute.xlu0 %515 }
  0x9e   :  { %v602_v48 = vsub.f32 %v410_v53, %v501_v15  ;;  %v1776_v15 = vld [vmem:[#allocation6_spill] sm:$0xff]  ;;  %v681_v35 = vsel %vm75_vm0, %v630_v30, 0.0  ;;  %v1780_v53 = vld [vmem:[#allocation5_spill] sm:$0xff]  ;;  %v605_v7 = vsub.f32 %v413_v21, %v1546_v4  ;;  %v604_v30 = vsub.f32 %v412_v45, %v1529_v58  ;;  %v1785_v58 = vld [vmem:[#allocation20_spill] sm:$0xff] }
  0x9f   :  { %v421_v18 = vsub.f32 %v1776_v15, %v1590_v49  ;;  %v420_v12 = vsub.f32 %v1780_v53, %v1590_v49  ;;  %v1784_v4 = vld [vmem:[#allocation10_spill] sm:$0xff] }
  0xa0   :  { %v634_v29 = vmul.f32 %v1779_v23, %v602_v48  ;;  %v682_v48 = vadd.f32 %v681_v35, %v680_v31  ;;  %v637_v45 = vmul.f32 %v1785_v58, %v605_v7  ;;  %v1788_v23 = vld [vmem:[#allocation19_spill] sm:$0xff]  ;;  %v1794_v58 = vld [vmem:[#allocation28_spill] sm:$0xff] }
  0xa1   :  { %v536_v13 = vpop.permute.xlu1 %535  ;;  %v531_v36 = vpop.permute.xlu0 %530  ;;  %v636_v53 = vmul.f32 %v1788_v23, %v604_v30  ;;  %v1791_v31 = vld [vmem:[#allocation23_spill] sm:$0xff] }
  0xa2   :  { %v694_v5 = vsel %vm75_vm0, %v634_v29, 0.0  ;;  %v608_v10 = vsub.f32 %v416_v3, %v531_v36  ;;  %v1789_v36 = vld [vmem:[#allocation24_spill] sm:$0xff]  ;;  %v1790_v3 = vld [vmem:[#allocation22_spill] sm:$0xff] }
  0xa5   :  { %v521_v43 = vpop.permute.xlu1 %520  ;;  %v486_v41 = vpop.permute.xlu0 %485 }
  0xa6   :  { %v599_v52 = vsub.f32 %v407_v28, %v486_v41  ;;  %v1609_v28 = vmul.f32 0.6931472, %v890_v54  ;;  %v692_v41 = vsel %vm75_vm0, %v633_v16, 0.0  ;;  %v691_v54 = vsel %vm75_vm0, %v632_v8, 0.0 }
  0xa7   :  { %v606_v24 = vsub.f32 %v414_v32, %v521_v43  ;;  %v693_v8 = vadd.f32 %v692_v41, %v691_v54  ;;  %v640_v41 = vmul.f32 %v1791_v31, %v608_v10 }
  0xa8   :  { %v631_v37 = vmul.f32 %v1775_v39, %v599_v52  ;;  %v609_v52 = vsub.f32 %v417_v63, %v536_v13  ;;  %v425_v27 = vsub.f32 %v1783_v62, %v1609_v28  ;;  %v661_v39 = vrot.slane %v660_v14, 2  ;;  %v1786_v13 = vld [vmem:[#allocation17_spill] sm:$0xff] }
  0xa9   :  { %v556_v11 = vpop.permute.xlu1 %555  ;;  %v551_v47 = vpop.permute.xlu0 %550  ;;  %v424_v21 = vsub.f32 %v1784_v4, %v1609_v28  ;;  %v426_v35 = vsub.f32 %v1787_v6, %v1609_v28  ;;  %v695_v29 = vadd.f32 %v694_v5, %v693_v8  ;;  %v427_v26 = vsub.f32 %v1790_v3, %v1609_v28  ;;  %v1796_v6 = vld [vmem:[#allocation31_spill] sm:$0xff] }
  0xaa   :  { %v683_v19 = vsel %vm75_vm0, %v631_v37, 0.0  ;;  %v673_v37 = vadd.f32 %v672_v57, %v671_v1  ;;  %v641_v43 = vmul.f32 %v1789_v36, %v609_v52  ;;  %v1792_v1 = vld [vmem:[#allocation21_spill] sm:$0xff]  ;;  %v705_v52 = vsel %vm75_vm0, %v637_v45, 0.0 }
  0xab   :  { %v684_v15 = vadd.f32 %v683_v19, %v682_v48  ;;  %v638_v57 = vmul.f32 %v1792_v1, %v606_v24  ;;  %v1644_v19 = vadd.f32 %v661_v39, %v660_v14  ;;  %v704_v8 = vsel %vm75_vm0, %v636_v53, 0.0  ;;  %v1793_v39 = vld [vmem:[#allocation26_spill] sm:$0xff]  ;;  %v1797_v53 = vld [vmem:[#allocation25_spill] sm:$0xff] }
  0xac   :  { %v674_v62 = vrot.slane %v673_v37, 2  ;;  %v718_v28 = vsel %vm75_vm0, %v641_v43, 0.0  ;;  %v612_v10 = vsub.f32 %v420_v12, %v551_v47  ;;  %v1795_v47 = vld [vmem:[#allocation32_spill] sm:$0xff]  ;;  %v1799_v1 = vld [vmem:[#allocation30_spill] sm:$0xff] }
  0xad   :  { %v541_v20 = vpop.permute.xlu1 %540  ;;  %v506_v9 = vpop.permute.xlu0 %505  ;;  %v685_v48 = vrot.slane %v684_v15, 4  ;;  %v707_v14 = vsel %vm75_vm0, %v638_v57, 0.0 }
  0xae   :  { %v603_v16 = vsub.f32 %v411_v46, %v506_v9  ;;  %v610_v54 = vsub.f32 %v418_v61, %v541_v20  ;;  %v613_v9 = vsub.f32 %v421_v18, %v556_v11  ;;  %v717_v20 = vsel %vm75_vm0, %v640_v41, 0.0 }
  0xaf   :  { %v719_v36 = vadd.f32 %v718_v28, %v717_v20 }
  0xb0   :  { %v635_v63 = vmul.f32 %v1786_v13, %v603_v16  ;;  %v642_v11 = vmul.f32 %v1793_v39, %v610_v54  ;;  %v645_v45 = vmul.f32 %v1794_v58, %v613_v9  ;;  %v1800_v9 = vld [vmem:[#allocation34_spill] sm:$0xff]  ;;  %v1803_v58 = vld [vmem:[#allocation33_spill] sm:$0xff] }
  0xb1   :  { %v576_v46 = vpop.permute.xlu1 %575  ;;  %v571_v32 = vpop.permute.xlu0 %570 }
  0xb2   :  { %v696_v7 = vsel %vm75_vm0, %v635_v63, 0.0  ;;  %v617_v5 = vsub.f32 %v425_v27, %v576_v46  ;;  %v616_v16 = vsub.f32 %v424_v21, %v571_v32  ;;  %v706_v27 = vadd.f32 %v705_v52, %v704_v8  ;;  %v1798_v46 = vld [vmem:[#allocation27_spill] sm:$0xff] }
  0xb3   :  { %v697_v30 = vadd.f32 %v696_v7, %v695_v29  ;;  %v686_v21 = vadd.f32 %v685_v48, %v684_v15  ;;  %v675_v63 = vadd.f32 %v674_v62, %v673_v37  ;;  %v644_v32 = vmul.f32 %v1798_v46, %v612_v10  ;;  %v1801_v62 = vld [vmem:[#allocation29_spill] sm:$0xff] }
  0xb4   :  { %v649_v12 = vmul.f32 %v1795_v47, %v617_v5  ;;  %v648_v23 = vmul.f32 %v1796_v6, %v616_v16  ;;  %v708_v43 = vadd.f32 %v707_v14, %v706_v27  ;;  %v720_v59 = vsel %vm75_vm0, %v642_v11, 0.0 }
  0xb5   :  { %v698_v4 = vrot.slane %v697_v30, 4  ;;  %v561_v24 = vpop.permute.xlu1 %560  ;;  %v526_v61 = vpop.permute.xlu0 %525  ;;  %v687_v37 = vrot.slane %v686_v21, 2  ;;  %v731_v41 = vsel %vm75_vm0, %v645_v45, 0.0  ;;  %v721_v5 = vadd.f32 %v720_v59, %v719_v36 }
  0xb6   :  { %v607_v18 = vsub.f32 %v415_v42, %v526_v61  ;;  %v614_v13 = vsub.f32 %v422_v56, %v561_v24  ;;  %v744_v7 = vsel %vm75_vm0, %v649_v12, 0.0  ;;  %v743_v48 = vsel %vm75_vm0, %v648_v23, 0.0 }
  0xb7   :  { %v699_v3 = vadd.f32 %v698_v4, %v697_v30  ;;  %v745_v24 = vadd.f32 %v744_v7, %v743_v48  ;;  %v688_v39 = vadd.f32 %v687_v37, %v686_v21 }
  0xb8   :  { %v639_v29 = vmul.f32 %v1797_v53, %v607_v18  ;;  %v646_v57 = vmul.f32 %v1799_v1, %v614_v13  ;;  %v1802_v18 = vld [vmem:[#allocation35_spill] sm:$0xff] }
  0xb9   :  { %v581_v31 = vpop.permute.xlu1 %580  ;;  %v546_v2 = vpop.permute.xlu0 %545  ;;  %v700_v16 = vrot.slane %v699_v3, 2 }
  0xba   :  { %v709_v42 = vsel %vm75_vm0, %v639_v29, 0.0  ;;  %v618_v15 = vsub.f32 %v426_v35, %v581_v31  ;;  %v611_v56 = vsub.f32 %v419_v60, %v546_v2  ;;  %v730_v35 = vsel %vm75_vm0, %v644_v32, 0.0 }
  0xbb   :  { %v710_v54 = vadd.f32 %v709_v42, %v708_v43  ;;  %v733_v61 = vsel %vm75_vm0, %v646_v57, 0.0  ;;  %v732_v11 = vadd.f32 %v731_v41, %v730_v35  ;;  %v701_v13 = vadd.f32 %v700_v16, %v699_v3 }
  0xbc   :  { %v650_v30 = vmul.f32 %v1800_v9, %v618_v15  ;;  %v643_v52 = vmul.f32 %v1801_v62, %v611_v56  ;;  %v689_v29 = vrot.slane %v688_v39, 1  ;;  %v663_v43 = vrot.slane %v1644_v19, 1 }
  0xbd   :  { %v711_v34 = vrot.slane %v710_v54, 4  ;;  %v586_v51 = vpop.permute.xlu1 %585  ;;  %v566_v60 = vpop.permute.xlu0 %565  ;;  %v702_v46 = vrot.slane %v701_v13, 1 }
  0xbe   :  { %v746_v8 = vsel %vm75_vm0, %v650_v30, 0.0  ;;  %v722_v28 = vsel %vm75_vm0, %v643_v52, 0.0  ;;  %v619_v10 = vsub.f32 %v427_v26, %v586_v51  ;;  %v615_v4 = vsub.f32 %v423_v50, %v566_v60  ;;  %v896_v30 = vpop.eup %895 }
  0xbf   :  { %v712_v20 = vadd.f32 %v711_v34, %v710_v54  ;;  %v723_v14 = vadd.f32 %v722_v28, %v721_v5  ;;  %v747_v12 = vadd.f32 %v746_v8, %v745_v24  ;;  %v734_v26 = vadd.f32 %v733_v61, %v732_v11  ;;  %v898_v5 = vpop.eup %897 }
  0xc0   :  { %v651_v27 = vmul.f32 %v1802_v18, %v619_v10  ;;  %v647_v45 = vmul.f32 %v1803_v58, %v615_v4  ;;  %v676_v50 = vrot.slane %v675_v63, 1  ;;  %v690_v15 = vadd.f32 %v689_v29, %v688_v39 }
  0xc1   :  { %v713_v47 = vrot.slane %v712_v20, 2  ;;  %v724_v6 = vrot.slane %v723_v14, 4  ;;  %v664_v37 = vadd.f32 %v663_v43, %v1644_v19  ;;  %v703_v41 = vadd.f32 %v702_v46, %v701_v13 }
  0xc2   :  { %v748_v49 = vsel %vm75_vm0, %v651_v27, 0.0  ;;  %v735_v22 = vsel %vm75_vm0, %v647_v45, 0.0  ;;  %v677_v2 = vadd.f32 %v676_v50, %v675_v63  ;;  %v766_v62 = vmul.f32 %v1574_v17, %v690_v15 }
  0xc3   :  { %v714_v23 = vadd.f32 %v713_v47, %v712_v20  ;;  %v725_v53 = vadd.f32 %v724_v6, %v723_v14  ;;  %v749_v21 = vadd.f32 %v748_v49, %v747_v12  ;;  %v736_v36 = vadd.f32 %v735_v22, %v734_v26 }
  0xc4   :  { %v765_v7 = vmul.f32 %v1563_v38, %v677_v2  ;;  %v764_v52 = vmul.f32 %v1552_v33, %v664_v37  ;;  %v767_v35 = vmul.f32 %v1584_v40, %v703_v41 }
  0xc5   :  { %v726_v32 = vrot.slane %v725_v53, 2  ;;  %v750_v3 = vrot.slane %v749_v21, 4  ;;  %v715_v31 = vrot.slane %v714_v23, 1  ;;  %v737_v0 = vrot.slane %v736_v36, 4 }
  0xc6   :  { %v781_v51 = vsel %vm780_vm1, %v765_v7, %v764_v52 }
  0xc7   :  { %v727_v59 = vadd.f32 %v726_v32, %v725_v53  ;;  %v751_v42 = vadd.f32 %v750_v3, %v749_v21  ;;  %v738_v56 = vadd.f32 %v737_v0, %v736_v36  ;;  %v716_v54 = vadd.f32 %v715_v31, %v714_v23 }
  0xc8   :  { %v783_v8 = vsel %vm782_vm2, %v766_v62, %v781_v51 }
  0xc9   :  { %v728_v1 = vrot.slane %v727_v59, 1  ;;  %v752_v57 = vrot.slane %v751_v42, 2  ;;  %v739_v25 = vrot.slane %v738_v56, 2  ;;  %v768_v16 = vmul.f32 %v1596_v55, %v716_v54 }
  0xca   :  { %v785_v28 = vsel %vm784_vm3, %v767_v35, %v783_v8 }
  0xcb   :  { %v729_v48 = vadd.f32 %v728_v1, %v727_v59  ;;  %v753_v9 = vadd.f32 %v752_v57, %v751_v42  ;;  %v740_v63 = vadd.f32 %v739_v25, %v738_v56  ;;  %v787_v33 = vsel %vm786_vm4, %v768_v16, %v785_v28 }
  0xcd   :  { %v754_v19 = vrot.slane %v753_v9, 1  ;;  %v741_v34 = vrot.slane %v740_v63, 1  ;;  %v769_v38 = vmul.f32 %v1619_v44, %v729_v48 }
  0xcf   :  { %v755_v60 = vadd.f32 %v754_v19, %v753_v9  ;;  %v742_v17 = vadd.f32 %v741_v34, %v740_v63  ;;  %v789_v4 = vsel %vm788_vm5, %v769_v38, %v787_v33 }
  0xd1   :  { %v771_v10 = vmul.f32 %v898_v5, %v755_v60  ;;  %v770_v40 = vmul.f32 %v896_v30, %v742_v17 }
  0xd3   :  { %v791_v24 = vsel %vm790_vm6, %v770_v40, %v789_v4 }
  0xd4   :  { %v793_v61 = vsel %vm792_vm7, %v771_v10, %v791_v24 }
  0xd5   :  { %795 = vst.msk [vmem:[%s1698_s2] sm:$0xff] %vm75_vm0, %v793_v61 }

</bundles_post_ra>
